<compile_context>
chip_gen: v7x
topology: tpu7x:2x2x1
jax: 0.10.0
libtpu: 0.0.40
codegen_flags: <defaults>
</compile_context>

<pallas_src>
import functools

import jax
import jax.numpy as jnp
from jax.experimental import pallas as pl
from jax.experimental.pallas import tpu as pltpu

VOCAB_SIZE = 65      # e.g. tiny-shakespeare character vocabulary
LANE = 128           # lane-padded vocab width (TPU lane count)
NEG = -1.0e30        # pad value for fake vocab columns (exp(NEG - m) == 0)
DEFAULT_TM = 1024    # rows per grid step (multiple of 8)


def _round_up(x, m):
    return ((x + m - 1) // m) * m


def _pad_table(table):
    """(V, V) -> (LANE, LANE).  Real block in the top-left corner, padded
    *columns* filled with NEG (so softmax/lse ignore them), padded rows 0.0."""
    v = table.shape[0]
    padded = jnp.zeros((LANE, LANE), dtype=jnp.float32)
    padded = padded.at[:v, v:].set(NEG)
    padded = padded.at[:v, :v].set(table.astype(jnp.float32))
    return padded


# ---------------------------------------------------------------------------
# kernels
# ---------------------------------------------------------------------------

def _logits_kernel(idx_ref, table_ref, logits_ref):
    # Inference / generate path: embedding gather only (one-hot @ table on MXU).
    tm = idx_ref.shape[0]
    col = jax.lax.broadcasted_iota(jnp.int32, (tm, LANE), 1)
    one_hot = (idx_ref[...] == col).astype(jnp.float32)
    logits_ref[...] = jnp.dot(one_hot, table_ref[...],
                              preferred_element_type=jnp.float32)


def _ce_tile(idx_ref, tgt_ref, table_ref, n_valid):
    """Compute (logits, masked per-row nll) for the current (TM, LANE) tile."""
    tm = idx_ref.shape[0]
    col = jax.lax.broadcasted_iota(jnp.int32, (tm, LANE), 1)

    # Embedding lookup as one-hot @ table (MXU-friendly gather).
    one_hot_idx = (idx_ref[...] == col).astype(jnp.float32)
    logits = jnp.dot(one_hot_idx, table_ref[...],
                     preferred_element_type=jnp.float32)

    # nll_i = (m_i + lse_i) - logits[i, tgt_i]  (no log_probs materialized).
    m = jnp.max(logits, axis=-1, keepdims=True)
    lse = jnp.log(jnp.sum(jnp.exp(logits - m), axis=-1, keepdims=True))
    one_hot_tgt = (tgt_ref[...] == col).astype(jnp.float32)
    picked = jnp.sum(one_hot_tgt * logits, axis=-1, keepdims=True)
    nll = (m + lse) - picked                                 # (TM, 1)

    # Mask rows that only exist because N was padded up to a block multiple.
    row = (pl.program_id(0) * tm
           + jax.lax.broadcasted_iota(jnp.int32, (tm, 1), 0))
    nll = jnp.where(row < n_valid, nll, 0.0)
    return logits, nll


def _logits_loss_kernel(idx_ref, tgt_ref, table_ref, logits_ref, nll_ref, *,
                        n_valid):
    logits, nll = _ce_tile(idx_ref, tgt_ref, table_ref, n_valid)
    logits_ref[...] = logits
    nll_ref[...] = nll


def _loss_only_kernel(idx_ref, tgt_ref, table_ref, nll_ref, *, n_valid):
    _, nll = _ce_tile(idx_ref, tgt_ref, table_ref, n_valid)
    nll_ref[...] = nll


# ---------------------------------------------------------------------------
# wrapper
# ---------------------------------------------------------------------------

def bigram_forward(idx, table, targets=None, *, return_logits=True,
                   pad_logits=False, block_rows=DEFAULT_TM):
    """Pallas equivalent of BigramLanguageModel.forward.

    return_logits=False (targets given): loss-only kernel, no logits writeback.
    pad_logits=True: return lane-padded (B, T, 128) logits (skips vocab slice).
    """
    B, T = idx.shape
    V = table.shape[0]
    N = B * T

    tm = min(block_rows, _round_up(N, 8))     # rows per grid step, multiple of 8
    n_pad = _round_up(N, tm)
    num_tiles = n_pad // tm

    idx_flat = idx.reshape(N, 1).astype(jnp.int32)
    if n_pad != N:
        idx_flat = jnp.pad(idx_flat, ((0, n_pad - N), (0, 0)))
    table_pad = _pad_table(table)                              # (LANE, LANE)

    idx_spec = pl.BlockSpec((tm, 1), lambda i: (i, 0))
    table_spec = pl.BlockSpec((LANE, LANE), lambda i: (0, 0))  # resident in VMEM
    logits_spec = pl.BlockSpec((tm, LANE), lambda i: (i, 0))
    nll_spec = pl.BlockSpec((tm, 1), lambda i: (i, 0))
    params = pltpu.CompilerParams(dimension_semantics=("parallel",))

    def _finish_logits(logits_pad):
        if pad_logits:
            return logits_pad[:N].reshape(B, T, LANE)
        return logits_pad[:N, :V].reshape(B, T, V)

    if targets is None:
        # Specialized inference path: gather only (hot path of generate()).
        # TODO(synk): generate()'s softmax + multinomial sampling loop is
        # host-side control flow; fusing per-step sampling into this kernel
        # (pltpu.prng_seed / prng_random_bits) is not implemented.
        cost = pl.CostEstimate(
            flops=2 * n_pad * LANE * LANE,
            transcendentals=0,
            bytes_accessed=4 * (LANE * LANE + n_pad * LANE + n_pad))
        logits_pad = pl.pallas_call(
            _logits_kernel,
            out_shape=jax.ShapeDtypeStruct((n_pad, LANE), jnp.float32),
            grid=(num_tiles,),
            in_specs=[idx_spec, table_spec],
            out_specs=logits_spec,
            compiler_params=params,
            cost_estimate=cost,
        )(idx_flat, table_pad)
        return _finish_logits(logits_pad), None

    tgt_flat = targets.reshape(N, 1).astype(jnp.int32)
    if n_pad != N:
        tgt_flat = jnp.pad(tgt_flat, ((0, n_pad - N), (0, 0)))

    if return_logits:
        cost = pl.CostEstimate(
            flops=2 * n_pad * LANE * LANE + 6 * n_pad * LANE,
            transcendentals=n_pad * LANE,
            bytes_accessed=4 * (LANE * LANE + n_pad * LANE + 3 * n_pad))
        logits_pad, nll = pl.pallas_call(
            functools.partial(_logits_loss_kernel, n_valid=N),
            out_shape=(jax.ShapeDtypeStruct((n_pad, LANE), jnp.float32),
                       jax.ShapeDtypeStruct((n_pad, 1), jnp.float32)),
            grid=(num_tiles,),
            in_specs=[idx_spec, idx_spec, table_spec],
            out_specs=(logits_spec, nll_spec),
            compiler_params=params,
            cost_estimate=cost,
        )(idx_flat, tgt_flat, table_pad)
        loss = jnp.sum(nll) / jnp.float32(N)
        return _finish_logits(logits_pad), loss

    # Loss-only path: skip the (N, 128) logits writeback entirely.
    cost = pl.CostEstimate(
        flops=2 * n_pad * LANE * LANE + 6 * n_pad * LANE,
        transcendentals=n_pad * LANE,
        bytes_accessed=4 * (LANE * LANE + 3 * n_pad))
    nll = pl.pallas_call(
        functools.partial(_loss_only_kernel, n_valid=N),
        out_shape=jax.ShapeDtypeStruct((n_pad, 1), jnp.float32),
        grid=(num_tiles,),
        in_specs=[idx_spec, idx_spec, table_spec],
        out_specs=nll_spec,
        compiler_params=params,
        cost_estimate=cost,
    )(idx_flat, tgt_flat, table_pad)
    loss = jnp.sum(nll) / jnp.float32(N)
    return None, loss


# ---------------------------------------------------------------------------
# reference + test
# ---------------------------------------------------------------------------

def _reference_forward(idx, table, targets):
    logits = table[idx]                                        # (B, T, V)
    B, T, V = logits.shape
    lf = logits.reshape(B * T, V)
    tf = targets.reshape(B * T)
    logp = jax.nn.log_softmax(lf, axis=-1)
    loss = -jnp.mean(logp[jnp.arange(B * T), tf])
    return logits, loss


if __name__ == "__main__":
    key = jax.random.PRNGKey(0)
    k_table, k_idx, k_tgt = jax.random.split(key, 3)

    B, T = 2, 8
    # nn.Embedding default init ~ N(0, 1)
    table = jax.random.normal(k_table, (VOCAB_SIZE, VOCAB_SIZE), dtype=jnp.float32)
    idx = jax.random.randint(k_idx, (B, T), 0, VOCAB_SIZE, dtype=jnp.int32)
    targets = jax.random.randint(k_tgt, (B, T), 0, VOCAB_SIZE, dtype=jnp.int32)

    ref_logits, ref_loss = _reference_forward(idx, table, targets)

    # 1) training path: logits + loss (torch-shaped (B, T, V) logits)
    logits, loss = bigram_forward(idx, table, targets)
    jax.block_until_ready((logits, loss))
    assert logits.shape == (B, T, VOCAB_SIZE)
    assert jnp.allclose(logits, ref_logits, atol=1e-5)
    assert jnp.allclose(loss, ref_loss, atol=1e-5)

    # 2) loss-only path (typical training step: no (N,128) logits writeback)
    no_logits, loss_only = bigram_forward(idx, table, targets,
                                          return_logits=False)
    jax.block_until_ready(loss_only)
    assert no_logits is None
    assert jnp.allclose(loss_only, ref_loss, atol=1e-5)

    # 3) inference / generate path, lane-padded logits (no post-kernel slice)
    logits_pad, none_loss = bigram_forward(idx, table, None, pad_logits=True)
    jax.block_until_ready(logits_pad)
    assert none_loss is None
    assert logits_pad.shape == (B, T, LANE)
    assert jnp.allclose(logits_pad[..., :VOCAB_SIZE], ref_logits, atol=1e-5)

    # 4) multi-tile grid + row-padding mask (N=21 rows, 8-row blocks -> 3 tiles)
    B2, T2 = 3, 7
    idx2 = jax.random.randint(k_idx, (B2, T2), 0, VOCAB_SIZE, dtype=jnp.int32)
    tgt2 = jax.random.randint(k_tgt, (B2, T2), 0, VOCAB_SIZE, dtype=jnp.int32)
    ref_logits2, ref_loss2 = _reference_forward(idx2, table, tgt2)
    logits2, loss2 = bigram_forward(idx2, table, tgt2, block_rows=8)
    jax.block_until_ready((logits2, loss2))
    assert logits2.shape == (B2, T2, VOCAB_SIZE)
    assert jnp.allclose(logits2, ref_logits2, atol=1e-5)
    assert jnp.allclose(loss2, ref_loss2, atol=1e-5)

    print("KERNEL_OK")
</pallas_src>

<mosaic_0001>
module attributes {stable_mosaic.version = 11 : i64} {
  func.func @_logits_loss_kernel(%arg0: i32, %arg1: memref<16x1xi32, #tpu.memory_space<vmem>>, %arg2: memref<16x1xi32, #tpu.memory_space<vmem>>, %arg3: memref<128x128xf32, #tpu.memory_space<vmem>>, %arg4: memref<16x128xf32, #tpu.memory_space<vmem>>, %arg5: memref<16x1xf32, #tpu.memory_space<vmem>>) attributes {dimension_semantics = [#tpu.dimension_semantics<parallel>], iteration_bounds = array<i64: 1>, scalar_prefetch = 0 : i64, scratch_operands = 0 : i64, tpu.core_type = #tpu.core_type<tc>, window_params = [{transform_indices = @transform_0, window_bounds = array<i64: 16, 1>}, {transform_indices = @transform_1, window_bounds = array<i64: 16, 1>}, {pipeline_mode = #tpu.pipeline_mode<synchronous>, transform_indices = @transform_2, window_bounds = array<i64: 128, 128>}, {transform_indices = @transform_3, window_bounds = array<i64: 16, 128>}, {transform_indices = @transform_4, window_bounds = array<i64: 16, 1>}]} {
    %0 = tpu.iota {dimensions = array<i32: 1>} : vector<16x128xi32>
    %c0 = arith.constant 0 : index
    %c0_0 = arith.constant 0 : index
    %1 = vector.load %arg1[%c0, %c0_0] : memref<16x1xi32, #tpu.memory_space<vmem>>, vector<16x1xi32>
    %2 = vector.broadcast %1 : vector<16x1xi32> to vector<16x128xi32>
    %3 = arith.cmpi eq, %2, %0 : vector<16x128xi32>
    %4 = arith.extui %3 : vector<16x128xi1> to vector<16x128xi32>
    %5 = arith.sitofp %4 : vector<16x128xi32> to vector<16x128xf32>
    %c0_1 = arith.constant 0 : index
    %c0_2 = arith.constant 0 : index
    %6 = vector.load %arg3[%c0_1, %c0_2] : memref<128x128xf32, #tpu.memory_space<vmem>>, vector<128x128xf32>
    %cst = arith.constant dense<0.000000e+00> : vector<16x128xf32>
    %7 = tpu.matmul %5, %6, %cst {dimension_numbers = #tpu.dot_dimension_numbers<[1], [0], [0], [1], [0, 0, 1, 1], [], []>} : vector<16x128xf32>, vector<128x128xf32>, vector<16x128xf32> -> vector<16x128xf32>
    %cst_3 = arith.constant dense<0xFF800000> : vector<16xf32>
    %8 = vector.multi_reduction <maximumf>, %7, %cst_3 [1] : vector<16x128xf32> to vector<16xf32>
    %9 = vector.shape_cast %8 : vector<16xf32> to vector<16x1xf32>
    %10 = vector.broadcast %9 : vector<16x1xf32> to vector<16x128xf32>
    %11 = arith.subf %7, %10 : vector<16x128xf32>
    %12 = math.exp %11 : vector<16x128xf32>
    %cst_4 = arith.constant dense<0.000000e+00> : vector<16xf32>
    %13 = vector.multi_reduction <add>, %12, %cst_4 [1] : vector<16x128xf32> to vector<16xf32>
    %14 = vector.shape_cast %13 : vector<16xf32> to vector<16x1xf32>
    %15 = math.log %14 : vector<16x1xf32>
    %c0_5 = arith.constant 0 : index
    %c0_6 = arith.constant 0 : index
    %16 = vector.load %arg2[%c0_5, %c0_6] : memref<16x1xi32, #tpu.memory_space<vmem>>, vector<16x1xi32>
    %17 = vector.broadcast %16 : vector<16x1xi32> to vector<16x128xi32>
    %18 = arith.cmpi eq, %17, %0 : vector<16x128xi32>
    %19 = arith.extui %18 : vector<16x128xi1> to vector<16x128xi32>
    %20 = arith.sitofp %19 : vector<16x128xi32> to vector<16x128xf32>
    %21 = arith.mulf %20, %7 : vector<16x128xf32>
    %cst_7 = arith.constant dense<0.000000e+00> : vector<16xf32>
    %22 = vector.multi_reduction <add>, %21, %cst_7 [1] : vector<16x128xf32> to vector<16xf32>
    %23 = vector.shape_cast %22 : vector<16xf32> to vector<16x1xf32>
    %24 = arith.addf %9, %15 : vector<16x1xf32>
    %25 = arith.subf %24, %23 : vector<16x1xf32>
    %c16_i32 = arith.constant 16 : i32
    %26 = arith.muli %arg0, %c16_i32 : i32
    %27 = tpu.iota {dimensions = array<i32: 0>} : vector<16x1xi32>
    %28 = vector.broadcast %26 : i32 to vector<16x1xi32>
    %29 = arith.addi %28, %27 : vector<16x1xi32>
    %c16_i32_8 = arith.constant 16 : i32
    %30 = vector.broadcast %c16_i32_8 : i32 to vector<16x1xi32>
    %31 = arith.cmpi slt, %29, %30 : vector<16x1xi32>
    %cst_9 = arith.constant 0.000000e+00 : f32
    %32 = vector.broadcast %cst_9 : f32 to vector<16x1xf32>
    %33 = arith.select %31, %25, %32 : vector<16x1xi1>, vector<16x1xf32>
    %c0_10 = arith.constant 0 : index
    %c0_11 = arith.constant 0 : index
    %34 = vector.load %arg4[%c0_10, %c0_11] : memref<16x128xf32, #tpu.memory_space<vmem>>, vector<16x128xf32>
    tpu.vector_store %arg4[%c0_10, %c0_11], %7 {strides = array<i32>} : memref<16x128xf32, #tpu.memory_space<vmem>>, vector<16x128xf32>,
    %c0_12 = arith.constant 0 : index
    %c0_13 = arith.constant 0 : index
    %35 = vector.load %arg5[%c0_12, %c0_13] : memref<16x1xf32, #tpu.memory_space<vmem>>, vector<16x1xf32>
    tpu.vector_store %arg5[%c0_12, %c0_13], %33 {strides = array<i32>} : memref<16x1xf32, #tpu.memory_space<vmem>>, vector<16x1xf32>,
    return
  }
  func.func @transform_0(%arg0: i32) -> (i32, i32) {
    %c0_i32 = arith.constant 0 : i32
    %c0_i32_0 = arith.constant 0 : i32
    return %arg0, %c0_i32 : i32, i32
  }
  func.func @transform_1(%arg0: i32) -> (i32, i32) {
    %c0_i32 = arith.constant 0 : i32
    %c0_i32_0 = arith.constant 0 : i32
    return %arg0, %c0_i32 : i32, i32
  }
  func.func @transform_2(%arg0: i32) -> (i32, i32) {
    %c0_i32 = arith.constant 0 : i32
    %c0_i32_0 = arith.constant 0 : i32
    %c0_i32_1 = arith.constant 0 : i32
    return %c0_i32, %c0_i32_0 : i32, i32
  }
  func.func @transform_3(%arg0: i32) -> (i32, i32) {
    %c0_i32 = arith.constant 0 : i32
    %c0_i32_0 = arith.constant 0 : i32
    return %arg0, %c0_i32 : i32, i32
  }
  func.func @transform_4(%arg0: i32) -> (i32, i32) {
    %c0_i32 = arith.constant 0 : i32
    %c0_i32_0 = arith.constant 0 : i32
    return %arg0, %c0_i32 : i32, i32
  }
}

</mosaic_0001>

<bundles_post_ra>
// kernel: tpu_custom_call.1
= control target key start
LH: loop header
LB: loop body
LE: loop exit
PB: predicated region body
PF: predicated region fallthrough
CT: control target
= control target key end

     0   :  { %10 = vsyncpa [#allocation3], 0  ;;  %s453_s0 = inlined_call_operand.vmem [shape: s32[16,1], index: 0, kind: input, shape index: {}]   ;;  %s454_s1 = inlined_call_operand.vmem [shape: s32[16,1], index: 1, kind: input, shape index: {}]   ;;  %s455_s2 = inlined_call_operand.hbm [shape: f32[128,128], index: 2, kind: input, shape index: {}]   ;;  %s456_s3 = inlined_call_operand.hbm [shape: f32[16,128], index: 3, kind: output, shape index: {0}]   ;;  %s457_s4 = inlined_call_operand.vmem [shape: f32[16,1], index: 4, kind: output, shape index: {1}]  }
   0x1   :  { %11 = vsyncpa [#allocation4], 0  ;;  %s373_s15 = smov [#allocation2]   ;;  %s325_s19 = scalar_lea.hbm %s455_s2, 2048 }
   0x2   :  { %s21_s16 = sshll.u32 %s373_s15, 4  ;;  %p326_p0 = scmp.ne.s32.totalorder %s455_s2, %s325_s19  ;;  %s22_s16 = int_to_ptr.vmem [resolvable:$true] %s21_s16 }
   0x3   :  { %p329_p1 = scmp.lt.u32.totalorder %s325_s19, %s455_s2 }
   0x5   :  { %p331_p2 = pnand %p329_p1, %p326_p0 }
   0x7   :  { %334 = shalt.err (!%p331_p2)
}
   0x8   :  { %s335_s24 = scalar_lea.vmem %s22_s16, 2048  ;;  %p340_p4 = scmp.lt.s32.totalorder %s22_s16, %s22_s16 }
   0x9   :  { %p336_p3 = scmp.ne.s32.totalorder %s22_s16, %s335_s24  ;;  %p341_p5 = scmp.lt.s32.totalorder %s335_s24, %s335_s24 }
   0xb   :  { %p342_p6 = por %p341_p5, %p340_p4 }
   0xd   :  { %p343_p7 = pnand %p342_p6, %p336_p3 }
   0xf   :  { %346 = shalt.err (!%p343_p7)
}
  0x10   :  { %s374_s25 = smov 128   ;;  %s375_s26 = smov 8  }
  0x11   :  { %27 = dma.hbm_to_vmem [thread:$0]  %s455_s2, 2048, %s22_s16, [#allocation3], %s374_s25, %s374_s25, %s375_s26  }
  0x12   :  { %369 = dma.done.wait [#allocation3], 2048  }
  0x13   :  { %370 = vsyncadd [#allocation3], 4294965248  ;;  %v376_v0 = vmov 0   ;;  %v33_v1 = vld [vmem:[%s453_s0] sm:$0xff]  ;;  %v48_v3 = vld [vmem:[#allocation2 + $0x8] sm:$0xff]  ;;  %v31_v28 = vlaneseq  ;;  %v377_v31 = vmov 1.0  }
  0x14   :  { %315 = vset.pattern.permute.xlu0 %v376_v0  ;;  %316 = vset.pattern.permute.xlu1 %v376_v0  ;;  %v47_v2 = vld [vmem:[#allocation2] sm:$0xff]  ;;  %v49_v4 = vld [vmem:[#allocation2 + $0x10] sm:$0xff]  ;;  %v34_v5 = vld [vmem:[%s453_s0 + $0x8] sm:$0xff]  ;;  %v378_v46 = vmov 0.0  }
  0x15   :  { %36 = vperm.xlu0 %315, %v33_v1   ;;  %v276_v6 = vpack.c.bf16 %v48_v3, %v47_v2  ;;  %v50_v7 = vld [vmem:[#allocation2 + $0x18] sm:$0xff]  ;;  %v51_v9 = vld [vmem:[#allocation2 + $0x20] sm:$0xff]  ;;  %v52_v10 = vld [vmem:[#allocation2 + $0x28] sm:$0xff]  ;;  %v32_v29 = vand.u32 127, %v31_v28 }
  0x16   :  { %v280_v8 = vpack.c.bf16 %v50_v7, %v49_v4  ;;  %v156_v11 = vld [vmem:[%s454_s1] sm:$0xff]  ;;  %v284_v12 = vpack.c.bf16 %v52_v10, %v51_v9  ;;  %v53_v13 = vld [vmem:[#allocation2 + $0x30] sm:$0xff]  ;;  %v54_v14 = vld [vmem:[#allocation2 + $0x38] sm:$0xff] }
  0x17   :  { %277 = vmatprep.subr.bf16.mxu0 %v276_v6  ;;  %v288_v15 = vpack.c.bf16 %v54_v14, %v53_v13  ;;  %v55_v16 = vld [vmem:[#allocation2 + $0x40] sm:$0xff]  ;;  %v56_v17 = vld [vmem:[#allocation2 + $0x48] sm:$0xff]  ;;  %v57_v19 = vld [vmem:[#allocation2 + $0x50] sm:$0xff] }
  0x18   :  { %279 = vmatpush3.bf16.msra.mxu0 %v276_v6  ;;  %v292_v18 = vpack.c.bf16 %v56_v17, %v55_v16  ;;  %v58_v20 = vld [vmem:[#allocation2 + $0x58] sm:$0xff]  ;;  %v59_v22 = vld [vmem:[#allocation2 + $0x60] sm:$0xff]  ;;  %v60_v23 = vld [vmem:[#allocation2 + $0x68] sm:$0xff] }
  0x19   :  { %39 = vperm.xlu0 %315, %v34_v5   ;;  %281 = vmatprep.subr.bf16.mxu0 %v280_v8  ;;  %v296_v21 = vpack.c.bf16 %v58_v20, %v57_v19  ;;  %v300_v24 = vpack.c.bf16 %v60_v23, %v59_v22  ;;  %v61_v25 = vld [vmem:[#allocation2 + $0x70] sm:$0xff]  ;;  %v62_v26 = vld [vmem:[#allocation2 + $0x78] sm:$0xff]  ;;  %v157_v35 = vld [vmem:[%s454_s1 + $0x8] sm:$0xff]  ;;  %s379_s1 = smov [#allocation5]  }
  0x1a   :  { %v304_v27 = vpack.c.bf16 %v62_v26, %v61_v25  ;;  %s201_s9 = sshll.u32 %s379_s1, 4  ;;  %s202_s9 = int_to_ptr.vmem [resolvable:$true] %s201_s9 }
  0x1b   :  { %s347_s10 = scalar_lea.vmem %s202_s9, 256  ;;  %p352_p9 = scmp.lt.s32.totalorder %s202_s9, %s202_s9 }
  0x1c   :  { %283 = vmatpush3.bf16.msra.mxu0 %v280_v8  ;;  %p348_p8 = scmp.ne.s32.totalorder %s202_s9, %s347_s10  ;;  %p353_p10 = scmp.lt.s32.totalorder %s347_s10, %s347_s10 }
  0x1d   :  { %159 = vperm.xlu0 %315, %v156_v11   ;;  %285 = vmatprep.subr.bf16.mxu0 %v284_v12 }
  0x1e   :  { %p354_p11 = por %p353_p10, %p352_p9 }
  0x20   :  { %287 = vmatpush3.bf16.msra.mxu0 %v284_v12  ;;  %p355_p12 = pnand %p354_p11, %p348_p8 }
  0x21   :  { %289 = vmatprep.subr.bf16.mxu0 %v288_v15 }
  0x24   :  { %291 = vmatpush3.bf16.msra.mxu0 %v288_v15 }
  0x25   :  { %293 = vmatprep.subr.bf16.mxu0 %v292_v18 }
  0x28   :  { %295 = vmatpush3.bf16.msra.mxu0 %v292_v18 }
  0x29   :  { %297 = vmatprep.subr.bf16.mxu0 %v296_v21 }
  0x2c   :  { %299 = vmatpush3.bf16.msra.mxu0 %v296_v21 }
  0x2d   :  { %301 = vmatprep.subr.bf16.mxu0 %v300_v24 }
  0x30   :  { %303 = vmatpush3.bf16.msra.mxu0 %v300_v24 }
  0x31   :  { %305 = vmatprep.subr.bf16.mxu0 %v304_v27 }
  0x34   :  { %307 = vmatpush3.bf16.msra.mxu0 %v304_v27 }
  0x94   :  { %v37_v30 = vpop.permute.xlu0 %36 }
  0x95   :  { %vm41_vm0 = vcmp.eq.s32.totalorder %v37_v30, %v32_v29 }
  0x96   :  { %273 = vmatprep.mubr.msk.f32.mxu0 %vm41_vm0, %v377_v31 }
  0x98   :  { %v40_v32 = vpop.permute.xlu0 %39 }
  0x99   :  { %vm42_vm1 = vcmp.eq.s32.totalorder %v40_v32, %v32_v29 }
  0x9a   :  { %274 = vmatmul.mubr.msk.f32.vlgmr.msra.gmra.mrb[0].mxu0 %vm42_vm1, %v377_v31 }
  0x9c   :  { %v160_v43 = vpop.permute.xlu0 %159 }
  0x9d   :  { %vm164_vm2 = vcmp.eq.s32.totalorder %v160_v43, %v32_v29 }
  0x9e   :  { %v221_v47 = vsel %vm164_vm2, 1.0, %v378_v46 }
 0x16d   :  { %v275_v33 = vpop.f32.mrb[0].mxu0 }
 0x16e   :  { %192 = vst [vmem:[#allocation5 + $0x8] sm:$0xff] %v275_v33  ;;  %140 = vmax.xlane.f32.xlu1 %v275_v33  ;;  %v129_v34 = vpop.f32.mrb[1].mxu0 }
 0x16f   :  { %191 = vst [vmem:[#allocation5] sm:$0xff] %v129_v34  ;;  %v170_v48 = vmul.f32 %v221_v47, %v129_v34 }
 0x172   :  { %138 = vmax.xlane.f32.xlu1 %v129_v34 }
 0x183   :  { %162 = vperm.xlu1 %316, %v157_v35  }
 0x1fb   :  { %v141_v36 = vpop.xlane.xlu1 %140 }
 0x1fc   :  { %v143_v37 = vsub.f32 %v275_v33, %v141_v36 }
 0x1fe   :  { %v146_v38 = vmul.f32 1.442695, %v143_v37 }
 0x1ff   :  { %v139_v39 = vpop.xlane.xlu1 %138 }
 0x200   :  { %317 = vpow2.f32 %v146_v38  ;;  %v142_v40 = vsub.f32 %v129_v34, %v139_v39 }
 0x202   :  { %v144_v41 = vmul.f32 1.442695, %v142_v40 }
 0x203   :  { %v163_v44 = vpop.permute.xlu1 %162 }
 0x204   :  { %319 = vpow2.f32 %v144_v41  ;;  %vm165_vm3 = vcmp.eq.s32.totalorder %v163_v44, %v32_v29 }
 0x205   :  { %v222_v49 = vsel %vm165_vm3, 1.0, %v378_v46 }
 0x206   :  { %v171_v50 = vmul.f32 %v275_v33, %v222_v49 }
 0x20a   :  { %v318_v42 = vpop.eup %317 }
 0x20b   :  { %150 = vadd.xlane.f32.xlu1 %v318_v42 }
 0x20e   :  { %v320_v45 = vpop.eup %319 }
 0x20f   :  { %148 = vadd.xlane.f32.xlu0 %v320_v45 }
 0x213   :  { %172 = vadd.xlane.f32.xlu0 %v170_v48 }
 0x217   :  { %174 = vadd.xlane.f32.xlu0 %v171_v50 }
 0x218   :  { %358 = shalt.err (!%p355_p12)
}
 0x219   :  { %s359_s13 = scalar_lea.hbm %s456_s3, 256 }
 0x21a   :  { %p360_p13 = scmp.ne.s32.totalorder %s456_s3, %s359_s13  ;;  %p363_p0 = scmp.lt.u32.totalorder %s359_s13, %s456_s3 }
 0x21c   :  { %p365_p1 = pnand %p363_p0, %p360_p13 }
 0x21e   :  { %368 = shalt.err (!%p365_p1)
}
 0x21f   :  { %207 = dma.vmem_to_hbm [thread:$0]  %s202_s9, 256, %s456_s3, [#allocation4], %s374_s25, %s374_s25, %s375_s26   ;;  %vm193_vm4 = vcmask 7168  }
 0x298   :  { %v151_v51 = vpop.xlane.xlu1 %150 }
 0x299   :  { %321 = vlog2.f32 %v151_v51 }
 0x29c   :  { %v149_v52 = vpop.xlane.xlu0 %148 }
 0x29d   :  { %323 = vlog2.f32 %v149_v52 }
 0x2a0   :  { %v173_v53 = vpop.xlane.xlu0 %172 }
 0x2a3   :  { %v322_v54 = vpop.eup %321 }
 0x2a4   :  { %v155_v55 = vmul.f32 0.6931472, %v322_v54  ;;  %v175_v58 = vpop.xlane.xlu0 %174 }
 0x2a6   :  { %v177_v56 = vadd.f32 %v155_v55, %v141_v36 }
 0x2a7   :  { %v324_v57 = vpop.eup %323 }
 0x2a8   :  { %v153_v59 = vmul.f32 0.6931472, %v324_v57  ;;  %v179_v60 = vsub.f32 %v177_v56, %v175_v58 }
 0x2aa   :  { %v176_v61 = vadd.f32 %v153_v59, %v139_v39  ;;  %195 = vst.msk [vmem:[%s457_s4 + $0x8] sm:$0xff] %vm193_vm4, %v179_v60 }
 0x2ac   :  { %v178_v62 = vsub.f32 %v176_v61, %v173_v53 }
 0x2ae   :  { %194 = vst.msk [vmem:[%s457_s4] sm:$0xff] %vm193_vm4, %v178_v62 }
 0x2af   :  { %371 = dma.done.wait [#allocation4], 256  }
 0x2b0   :  { %372 = vsyncadd [#allocation4], 4294967040 }
 0x2b1   :  { %215 = vsyncpa [#allocation3], 1 }
 0x2b2   :  { %216 = vsyncpa [#allocation4], 1 }

</bundles_post_ra>
